<compile_context>
chip_gen: v7x
topology: tpu7x:2x2x1
jax: 0.10.0
libtpu: 0.0.40
codegen_flags: <defaults>
</compile_context>

<pallas_src>
import math

import jax
import jax.numpy as jnp
from jax import lax
from jax.experimental import pallas as pl
from jax.experimental.pallas import tpu as pltpu

GRID_BOUNDS = (-100.0, 100.0)
FUSED_N_MAX = 512        # up to this many rows the whole forward runs in one pallas_call


def _round_up(x, m):
    return ((x + m - 1) // m) * m


def _vmem_budget():
    """Generation-aware scoped-VMEM budget in bytes.

    v5e/v6e have 128 MiB VMEM per TensorCore, v7x only 64 MiB. Cap the request
    comfortably under physical capacity so bigger tiles / D never become a
    compile-time over-request on v7x; fall back to the conservative 64 MiB
    assumption if the query is unavailable.
    """
    cap = 64 * 1024 * 1024
    try:
        cap = int(pltpu.get_tpu_info().vmem_capacity_bytes)
    except Exception:
        pass
    return max(min(cap - 16 * 1024 * 1024, 96 * 1024 * 1024), 16 * 1024 * 1024)


# --------------------------------------------------------------------------
# Fully fused forward for small N: MLP + in-kernel min/max + RBF covariance.
# Output is the (D, N, N) covariance; the constant mean is produced in XLA.
# --------------------------------------------------------------------------
def fused_dkl_kernel(x_ref, w1_ref, b1_ref, w2t_ref, b2t_ref, scal_ref, covar_ref):
    outputscale = scal_ref[0]
    coef = scal_ref[1]          # -0.5 / lengthscale^2
    bound_range = scal_ref[2]   # 0.95 * (upper - lower)

    # Feature-extractor MLP; second matmul contracts last dims so the feature
    # matrix is produced already transposed (D, N), lane-dense.
    h = jnp.dot(x_ref[...], w1_ref[...], preferred_element_type=jnp.float32) + b1_ref[...]
    h = jnp.maximum(h, 0.0)
    f = lax.dot_general(
        w2t_ref[...], h,
        dimension_numbers=(((1,), (1,)), ((), ())),
        preferred_element_type=jnp.float32,
    ) + b2t_ref[...]                                                     # (D, N)

    # scale_to_bounds: the offset cancels in (xi - xj), only the scale survives
    # and folds exactly into the RBF coefficient.
    diff = jnp.maximum(jnp.max(f) - jnp.min(f), 1e-12)
    s = bound_range / diff
    coef_eff = coef * (s * s)

    d = f[:, :, None] - f[:, None, :]                                    # (D, N, N)
    covar_ref[...] = outputscale * jnp.exp((d * d) * coef_eff)


def fused_forward(x_flat, w1, b1, w2, b2, scal):
    N, F = x_flat.shape
    H = w1.shape[1]
    D = w2.shape[1]
    w2t = w2.T                                                           # (D, H)
    b2t = b2.reshape(D, 1)                                               # (D, 1)

    covar = pl.pallas_call(
        fused_dkl_kernel,
        out_shape=jax.ShapeDtypeStruct((D, N, N), jnp.float32),
        grid=(1,),
        in_specs=[
            pl.BlockSpec((N, F), lambda i: (0, 0)),                      # x
            pl.BlockSpec((F, H), lambda i: (0, 0)),                      # W1
            pl.BlockSpec((1, H), lambda i: (0, 0)),                      # b1
            pl.BlockSpec((D, H), lambda i: (0, 0)),                      # W2^T
            pl.BlockSpec((D, 1), lambda i: (0, 0)),                      # b2 column
            pl.BlockSpec(memory_space=pltpu.MemorySpace.SMEM),           # scalars
        ],
        out_specs=pl.BlockSpec((D, N, N), lambda i: (0, 0, 0)),
        compiler_params=pltpu.CompilerParams(vmem_limit_bytes=_vmem_budget()),
    )(x_flat, w1, b1, w2t, b2t, scal)
    return covar


# --------------------------------------------------------------------------
# Kernel A (large N): feature extractor MLP, emitting the *transposed* features.
#   (N, F) -> (D, N), lane-dense output, no data transpose in or after the kernel.
# --------------------------------------------------------------------------
def feature_mlp_kernel(x_ref, w1_ref, b1_ref, w2t_ref, b2t_ref, out_ref):
    h = jnp.dot(x_ref[...], w1_ref[...], preferred_element_type=jnp.float32) + b1_ref[...]
    h = jnp.maximum(h, 0.0)                                              # (TM, H)
    f_t = lax.dot_general(
        w2t_ref[...], h,
        dimension_numbers=(((1,), (1,)), ((), ())),
        preferred_element_type=jnp.float32,
    ) + b2t_ref[...]                                                     # (D, TM)
    out_ref[...] = f_t.astype(out_ref.dtype)


def feature_extractor(x_flat, w1, b1, w2, b2):
    N, F = x_flat.shape
    H = w1.shape[1]
    D = w2.shape[1]

    # Large row tiles: the per-grid-step overhead (~0.35us) dwarfs the tiny MLP,
    # so run whole N in one step when it fits, else 1024-row tiles.
    if N <= 1024:
        tm, n_pad = N, N
    else:
        tm = 1024
        n_pad = _round_up(N, tm)

    xp = x_flat if n_pad == N else jnp.pad(x_flat, ((0, n_pad - N), (0, 0)))
    w2t = w2.T
    b2t = b2.reshape(D, 1)

    out = pl.pallas_call(
        feature_mlp_kernel,
        out_shape=jax.ShapeDtypeStruct((D, n_pad), jnp.float32),
        grid=(n_pad // tm,),
        in_specs=[
            pl.BlockSpec((tm, F), lambda i: (i, 0)),   # x rows
            pl.BlockSpec((F, H), lambda i: (0, 0)),    # W1 (replicated)
            pl.BlockSpec((1, H), lambda i: (0, 0)),    # b1
            pl.BlockSpec((D, H), lambda i: (0, 0)),    # W2^T
            pl.BlockSpec((D, 1), lambda i: (0, 0)),    # b2 column
        ],
        out_specs=pl.BlockSpec((D, tm), lambda i: (0, i)),   # transposed, lane-dense
        compiler_params=pltpu.CompilerParams(dimension_semantics=("parallel",)),
    )(xp, w1, b1, w2t, b2t)

    return out[:, :N]                                                    # (D, N)


# --------------------------------------------------------------------------
# Kernel B (large N): RBF covariance
#   covar[d,i,j] = outputscale * exp(coef' * (f[d,i] - f[d,j])^2),
# with coef' = -0.5 * scale_to_bounds_s^2 / lengthscale^2 precomputed (the
# affine offset cancels exactly in the difference). Tiled over (row, col)
# blocks of the N x N covariance; row axis is megacore-parallel.
# --------------------------------------------------------------------------
def rbf_covar_kernel(scal_ref, frow_ref, fcol_ref, covar_ref):
    outputscale = scal_ref[0]
    coef = scal_ref[1]                                                   # folded coefficient
    fr = frow_ref[...]                                                   # (D, TR)
    fc = fcol_ref[...]                                                   # (D, TC)
    d = fr[:, :, None] - fc[:, None, :]                                  # (D, TR, TC)
    # NOTE: keep covar in f32 for semantic fidelity with the torch module;
    # emitting bf16 here would halve the HBM-bound writeback on v5e/v6e.
    covar_ref[...] = outputscale * jnp.exp((d * d) * coef)


def gp_covar(feat_t, scal):
    D, N = feat_t.shape
    budget = _vmem_budget()

    if N <= 512:
        # Single block (used by the forced-tiled test path / edge cases).
        tr = tc = n_pad = N
    else:
        tr, tc = 512, 512
        n_pad = _round_up(N, 512)
        covar_block = lambda r, c: 4 * D * r * c                        # f32 bytes
        # Prefer 1024-wide column tiles when they cost no extra padding and the
        # double-buffered covar block stays well inside the VMEM budget.
        if n_pad % 1024 == 0 and 2 * covar_block(tr, 1024) <= budget // 2:
            tc = 1024
        # Shrink row tiles if (large D) the double-buffered block would not fit;
        # n_pad >= 1024 here so n_pad // tr >= 2 keeps the parallel row axis
        # splittable across v7x's two TensorCores.
        while 2 * covar_block(tr, tc) > budget // 2 and tr > 128:
            tr //= 2

    fp = feat_t if n_pad == N else jnp.pad(feat_t, ((0, 0), (0, n_pad - N)))

    cost = pl.CostEstimate(
        flops=3 * D * n_pad * n_pad,
        transcendentals=D * n_pad * n_pad,
        bytes_accessed=4 * (D * n_pad * n_pad + 2 * D * n_pad),
    )

    covar_p = pl.pallas_call(
        rbf_covar_kernel,
        out_shape=jax.ShapeDtypeStruct((D, n_pad, n_pad), jnp.float32),
        grid=(n_pad // tr, n_pad // tc),
        in_specs=[
            pl.BlockSpec(memory_space=pltpu.MemorySpace.SMEM),           # scalars
            pl.BlockSpec((D, tr), lambda r, c: (0, r)),                  # feat row block
            pl.BlockSpec((D, tc), lambda r, c: (0, c)),                  # feat col block
        ],
        out_specs=pl.BlockSpec((D, tr, tc), lambda r, c: (0, r, c)),
        compiler_params=pltpu.CompilerParams(
            dimension_semantics=("parallel", "arbitrary"),
            vmem_limit_bytes=budget,
        ),
        cost_estimate=cost,
    )(scal, fp, fp)

    if n_pad == N:
        return covar_p
    return covar_p[:, :N, :N]


# --------------------------------------------------------------------------
# DKLModel.forward
# --------------------------------------------------------------------------
def dkl_model_forward(x, params, force_tiled=False):
    B, S, F = x.shape
    N = B * S
    x_flat = x.reshape(N, F)                                             # glue reshape
    D = params["w2"].shape[1]

    # gp_params hold *constrained* values (softplus already applied host-side).
    constant = params["gp_params"][0]
    lengthscale = params["gp_params"][1]
    outputscale = params["gp_params"][2]
    coef = -0.5 / (lengthscale * lengthscale)

    lower, upper = GRID_BOUNDS
    bound_range = 0.95 * (upper - lower)   # scale_to_bounds scale numerator; offset cancels

    # ConstantMean() does not depend on the features -> trivial in XLA.
    mean = jnp.full((D, N), constant, dtype=jnp.float32)

    if N <= FUSED_N_MAX and not force_tiled:
        scal = jnp.stack(
            [outputscale, coef, jnp.float32(bound_range)]).astype(jnp.float32)
        covar = fused_forward(
            x_flat, params["w1"], params["b1"], params["w2"], params["b2"], scal)
    else:
        # (D, B*S): torch's `features.transpose(-1,-2)` is produced directly by
        # Kernel A's transposed lane-dense store; the trailing `.unsqueeze(-1)`
        # is the GP ard dim, implicit in the 1-d RBF below.
        feat_t = feature_extractor(
            x_flat, params["w1"], params["b1"], params["w2"], params["b2"])

        # gpytorch.utils.grid.scale_to_bounds reduced to its surviving scale
        # factor (tiny (D, N) reduction, done in plain JAX).
        fmin = jnp.min(feat_t)
        fmax = jnp.max(feat_t)
        diff = jnp.maximum(fmax - fmin, 1e-12)                           # degenerate-batch guard
        s = bound_range / diff
        coef_eff = coef * s * s

        scal = jnp.stack([outputscale, coef_eff]).astype(jnp.float32)
        covar = gp_covar(feat_t, scal)

    # TODO(synk): gpytorch's MultitaskVariationalStrategy /
    # GridInterpolationVariationalStrategy posterior (KISS-GP cubic interpolation
    # against 100 grid inducing points, CholeskyVariationalDistribution, whitening)
    # has no clean Pallas equivalent; we return the GP prior (mean, covariance)
    # exactly as GaussianProcessLayer.forward defines.
    return mean, covar


def make_params(key, f_in, hidden, num_dim):
    k1, k2, k3, k4 = jax.random.split(key, 4)
    w1 = jax.random.normal(k1, (f_in, hidden), jnp.float32) * 0.1
    b1 = jax.random.normal(k2, (1, hidden), jnp.float32) * 0.01
    w2 = jax.random.normal(k3, (hidden, num_dim), jnp.float32) * 0.1
    b2 = jax.random.normal(k4, (1, num_dim), jnp.float32) * 0.01
    # [ConstantMean constant, RBF lengthscale, ScaleKernel outputscale]
    # already-constrained values: gpytorch default raw params = 0 -> softplus(0) = ln 2
    gp_params = jnp.array([0.0, math.log(2.0), math.log(2.0)], jnp.float32)
    return dict(w1=w1, b1=b1, w2=w2, b2=b2, gp_params=gp_params)


if __name__ == "__main__":
    B, S, F_IN, HID, NUM_DIM = 2, 8, 32, 32, 4

    key = jax.random.PRNGKey(0)
    kx, kp = jax.random.split(key)
    x = jax.random.normal(kx, (B, S, F_IN), jnp.float32)
    params = make_params(kp, F_IN, HID, NUM_DIM)

    fwd = jax.jit(dkl_model_forward, static_argnames=("force_tiled",))

    constant = float(params["gp_params"][0])
    outputscale = float(params["gp_params"][2])

    # 1) Small config -> fully fused single-kernel path.
    N = B * S
    mean, covar = fwd(x, params)
    jax.block_until_ready((mean, covar))
    assert mean.shape == (NUM_DIM, N) and covar.shape == (NUM_DIM, N, N)
    assert bool(jnp.all(jnp.isfinite(mean))) and bool(jnp.all(jnp.isfinite(covar)))
    assert bool(jnp.allclose(mean, constant))
    diag = jnp.diagonal(covar, axis1=-2, axis2=-1)
    assert bool(jnp.allclose(diag, outputscale, rtol=1e-5, atol=1e-6))          # RBF(0)=1
    assert bool(jnp.allclose(covar, jnp.swapaxes(covar, -1, -2), rtol=1e-5, atol=1e-6))

    # 2) Same config forced through the tiled two-kernel path; must agree.
    mean_t, covar_t = fwd(x, params, force_tiled=True)
    jax.block_until_ready((mean_t, covar_t))
    assert bool(jnp.allclose(mean_t, mean))
    assert bool(jnp.allclose(covar_t, covar, rtol=1e-3, atol=1e-5))

    # 3) Larger config exercising the multi-tile covariance grid (pad + slice).
    B2, S2 = 2, 640                       # N = 1280 -> padded 1536, 3x3 covar grid
    N2 = B2 * S2
    x2 = jax.random.normal(jax.random.PRNGKey(1), (B2, S2, F_IN), jnp.float32)
    mean2, covar2 = fwd(x2, params)
    jax.block_until_ready((mean2, covar2))
    assert mean2.shape == (NUM_DIM, N2) and covar2.shape == (NUM_DIM, N2, N2)
    assert bool(jnp.all(jnp.isfinite(covar2)))
    diag2 = jnp.diagonal(covar2, axis1=-2, axis2=-1)
    assert bool(jnp.allclose(diag2, outputscale, rtol=1e-5, atol=1e-6))
    assert bool(jnp.allclose(covar2, jnp.swapaxes(covar2, -1, -2), rtol=1e-5, atol=1e-6))

    print("KERNEL_OK")
</pallas_src>

<mosaic_0001>
module attributes {stable_mosaic.version = 11 : i64} {
  func.func @fused_dkl_kernel(%arg0: i32, %arg1: memref<16x32xf32, #tpu.memory_space<vmem>>, %arg2: memref<32x32xf32, #tpu.memory_space<vmem>>, %arg3: memref<1x32xf32, #tpu.memory_space<vmem>>, %arg4: memref<4x32xf32, #tpu.memory_space<vmem>>, %arg5: memref<4x1xf32, #tpu.memory_space<vmem>>, %arg6: memref<3xf32, #tpu.memory_space<smem>>, %arg7: memref<4x16x16xf32, #tpu.memory_space<vmem>>) attributes {dimension_semantics = [#tpu.dimension_semantics<arbitrary>], iteration_bounds = array<i64: 1>, scalar_prefetch = 0 : i64, scratch_operands = 0 : i64, tpu.core_type = #tpu.core_type<tc>, window_params = [{pipeline_mode = #tpu.pipeline_mode<synchronous>, transform_indices = @transform_0, window_bounds = array<i64: 16, 32>}, {pipeline_mode = #tpu.pipeline_mode<synchronous>, transform_indices = @transform_1, window_bounds = array<i64: 32, 32>}, {pipeline_mode = #tpu.pipeline_mode<synchronous>, transform_indices = @transform_2, window_bounds = array<i64: 1, 32>}, {pipeline_mode = #tpu.pipeline_mode<synchronous>, transform_indices = @transform_3, window_bounds = array<i64: 4, 32>}, {pipeline_mode = #tpu.pipeline_mode<synchronous>, transform_indices = @transform_4, window_bounds = array<i64: 4, 1>}, {transform_indices = @transform_5, window_bounds = array<i64: 3>}, {pipeline_mode = #tpu.pipeline_mode<synchronous>, transform_indices = @transform_6, window_bounds = array<i64: 4, 16, 16>}]} {
    %c0 = arith.constant 0 : index
    %0 = memref.load %arg6[%c0] : memref<3xf32, #tpu.memory_space<smem>>
    %c1 = arith.constant 1 : index
    %1 = memref.load %arg6[%c1] : memref<3xf32, #tpu.memory_space<smem>>
    %c2 = arith.constant 2 : index
    %2 = memref.load %arg6[%c2] : memref<3xf32, #tpu.memory_space<smem>>
    %c0_0 = arith.constant 0 : index
    %c0_1 = arith.constant 0 : index
    %3 = vector.load %arg1[%c0_0, %c0_1] : memref<16x32xf32, #tpu.memory_space<vmem>>, vector<16x32xf32>
    %c0_2 = arith.constant 0 : index
    %c0_3 = arith.constant 0 : index
    %4 = vector.load %arg2[%c0_2, %c0_3] : memref<32x32xf32, #tpu.memory_space<vmem>>, vector<32x32xf32>
    %cst = arith.constant dense<0.000000e+00> : vector<16x32xf32>
    %5 = tpu.matmul %3, %4, %cst {dimension_numbers = #tpu.dot_dimension_numbers<[1], [0], [0], [1], [0, 0, 1, 1], [], []>} : vector<16x32xf32>, vector<32x32xf32>, vector<16x32xf32> -> vector<16x32xf32>
    %c0_4 = arith.constant 0 : index
    %c0_5 = arith.constant 0 : index
    %6 = vector.load %arg3[%c0_4, %c0_5] : memref<1x32xf32, #tpu.memory_space<vmem>>, vector<1x32xf32>
    %7 = vector.broadcast %6 : vector<1x32xf32> to vector<16x32xf32>
    %8 = arith.addf %5, %7 : vector<16x32xf32>
    %cst_6 = arith.constant 0.000000e+00 : f32
    %9 = vector.broadcast %cst_6 : f32 to vector<16x32xf32>
    %10 = arith.maximumf %8, %9 : vector<16x32xf32>
    %c0_7 = arith.constant 0 : index
    %c0_8 = arith.constant 0 : index
    %11 = vector.load %arg4[%c0_7, %c0_8] : memref<4x32xf32, #tpu.memory_space<vmem>>, vector<4x32xf32>
    %cst_9 = arith.constant dense<0.000000e+00> : vector<4x16xf32>
    %12 = tpu.matmul %11, %10, %cst_9 {dimension_numbers = #tpu.dot_dimension_numbers<[1], [1], [0], [0], [0, 0, 1, 0], [], []>} : vector<4x32xf32>, vector<16x32xf32>, vector<4x16xf32> -> vector<4x16xf32>
    %c0_10 = arith.constant 0 : index
    %c0_11 = arith.constant 0 : index
    %13 = vector.load %arg5[%c0_10, %c0_11] : memref<4x1xf32, #tpu.memory_space<vmem>>, vector<4x1xf32>
    %14 = vector.broadcast %13 : vector<4x1xf32> to vector<4x16xf32>
    %15 = arith.addf %12, %14 : vector<4x16xf32>
    %16 = vector.shape_cast %15 : vector<4x16xf32> to vector<1x4x16xf32>
    %cst_12 = arith.constant dense<0xFF800000> : vector<1xf32>
    %17 = vector.multi_reduction <maximumf>, %16, %cst_12 [1, 2] : vector<1x4x16xf32> to vector<1xf32>
    %18 = vector.shape_cast %17 : vector<1xf32> to vector<1x1x1xf32>
    %19 = vector.extract %18[0, 0, 0] : f32 from vector<1x1x1xf32>
    %20 = vector.shape_cast %15 : vector<4x16xf32> to vector<1x4x16xf32>
    %cst_13 = arith.constant dense<0x7F800000> : vector<1xf32>
    %21 = vector.multi_reduction <minimumf>, %20, %cst_13 [1, 2] : vector<1x4x16xf32> to vector<1xf32>
    %22 = vector.shape_cast %21 : vector<1xf32> to vector<1x1x1xf32>
    %23 = vector.extract %22[0, 0, 0] : f32 from vector<1x1x1xf32>
    %24 = arith.subf %19, %23 : f32
    %cst_14 = arith.constant 9.99999996E-13 : f32
    %25 = arith.maximumf %24, %cst_14 : f32
    %26 = arith.divf %2, %25 : f32
    %27 = arith.mulf %26, %26 : f32
    %28 = arith.mulf %1, %27 : f32
    %29 = vector.shape_cast %15 : vector<4x16xf32> to vector<4x16x1xf32>
    %30 = vector.shape_cast %15 : vector<4x16xf32> to vector<4x1x16xf32>
    %31 = vector.broadcast %29 : vector<4x16x1xf32> to vector<4x16x16xf32>
    %32 = vector.broadcast %30 : vector<4x1x16xf32> to vector<4x16x16xf32>
    %33 = arith.subf %31, %32 : vector<4x16x16xf32>
    %34 = arith.mulf %33, %33 : vector<4x16x16xf32>
    %35 = vector.broadcast %28 : f32 to vector<4x16x16xf32>
    %36 = arith.mulf %34, %35 : vector<4x16x16xf32>
    %37 = math.exp %36 : vector<4x16x16xf32>
    %38 = vector.broadcast %0 : f32 to vector<4x16x16xf32>
    %39 = arith.mulf %38, %37 : vector<4x16x16xf32>
    %c0_15 = arith.constant 0 : index
    %c0_16 = arith.constant 0 : index
    %c0_17 = arith.constant 0 : index
    %40 = vector.load %arg7[%c0_15, %c0_16, %c0_17] : memref<4x16x16xf32, #tpu.memory_space<vmem>>, vector<4x16x16xf32>
    tpu.vector_store %arg7[%c0_15, %c0_16, %c0_17], %39 {strides = array<i32>} : memref<4x16x16xf32, #tpu.memory_space<vmem>>, vector<4x16x16xf32>,
    return
  }
  func.func @transform_0(%arg0: i32) -> (i32, i32) {
    %c0_i32 = arith.constant 0 : i32
    %c0_i32_0 = arith.constant 0 : i32
    %c0_i32_1 = arith.constant 0 : i32
    return %c0_i32, %c0_i32_0 : i32, i32
  }
  func.func @transform_1(%arg0: i32) -> (i32, i32) {
    %c0_i32 = arith.constant 0 : i32
    %c0_i32_0 = arith.constant 0 : i32
    %c0_i32_1 = arith.constant 0 : i32
    return %c0_i32, %c0_i32_0 : i32, i32
  }
  func.func @transform_2(%arg0: i32) -> (i32, i32) {
    %c0_i32 = arith.constant 0 : i32
    %c0_i32_0 = arith.constant 0 : i32
    %c0_i32_1 = arith.constant 0 : i32
    return %c0_i32, %c0_i32_0 : i32, i32
  }
  func.func @transform_3(%arg0: i32) -> (i32, i32) {
    %c0_i32 = arith.constant 0 : i32
    %c0_i32_0 = arith.constant 0 : i32
    %c0_i32_1 = arith.constant 0 : i32
    return %c0_i32, %c0_i32_0 : i32, i32
  }
  func.func @transform_4(%arg0: i32) -> (i32, i32) {
    %c0_i32 = arith.constant 0 : i32
    %c0_i32_0 = arith.constant 0 : i32
    %c0_i32_1 = arith.constant 0 : i32
    return %c0_i32, %c0_i32_0 : i32, i32
  }
  func.func @transform_5(%arg0: i32) -> i32 {
    %c0_i32 = arith.constant 0 : i32
    %c0_i32_0 = arith.constant 0 : i32
    return %c0_i32 : i32
  }
  func.func @transform_6(%arg0: i32) -> (i32, i32, i32) {
    %c0_i32 = arith.constant 0 : i32
    %c0_i32_0 = arith.constant 0 : i32
    %c0_i32_1 = arith.constant 0 : i32
    %c0_i32_2 = arith.constant 0 : i32
    return %c0_i32, %c0_i32_0, %c0_i32_1 : i32, i32, i32
  }
}

</mosaic_0001>

<bundles_post_ra>
// kernel: dkl_model_forward.1
= control target key start
LH: loop header
LB: loop body
LE: loop exit
PB: predicated region body
PF: predicated region fallthrough
CT: control target
= control target key end

     0   :  { %11 = vsyncpa [#allocation3], 0  ;;  %s685_s0 = inlined_call_operand.vmem [shape: f32[16,32], index: 0, kind: input, shape index: {}]   ;;  %s686_s1 = inlined_call_operand.vmem [shape: f32[32,32], index: 1, kind: input, shape index: {}]   ;;  %s687_s2 = inlined_call_operand.vmem [shape: f32[1,32], index: 2, kind: input, shape index: {}]   ;;  %s688_s3 = inlined_call_operand.hbm [shape: f32[4,32], index: 3, kind: input, shape index: {}]   ;;  %s689_s4 = inlined_call_operand.vmem [shape: f32[4,1], index: 4, kind: input, shape index: {}]   ;;  %s690_s5 = inlined_call_operand.vmem [shape: f32[3], index: 5, kind: input, shape index: {}]   ;;  %s691_s6 = inlined_call_operand.hbm [shape: f32[4,16,16], index: 6, kind: output, shape index: {}]  }
   0x1   :  { %12 = vsyncpa [#allocation5], 0 }
   0x2   :  { %13 = vsyncpa [#allocation4], 0  ;;  %s38_s23 = sshll.u32 %s690_s5, 4  ;;  %s575_s24 = smov [#allocation2]   ;;  %s39_s23 = int_to_ptr.vmem [resolvable:$true] %s38_s23 }
   0x3   :  { %s26_s25 = sshll.u32 %s575_s24, 4  ;;  %s513_s28 = scalar_lea.hbm %s688_s3, 64  ;;  %s27_s25 = int_to_ptr.vmem [resolvable:$true] %s26_s25 }
   0x4   :  { %p514_p0 = scmp.ne.s32.totalorder %s688_s3, %s513_s28  ;;  %p517_p1 = scmp.lt.u32.totalorder %s513_s28, %s688_s3 }
   0x6   :  { %p519_p2 = pnand %p517_p1, %p514_p0 }
   0x8   :  { %522 = shalt.err (!%p519_p2)
}
   0x9   :  { %s523_s9 = scalar_lea.vmem %s27_s25, 64  ;;  %p528_p4 = scmp.lt.s32.totalorder %s27_s25, %s27_s25 }
   0xa   :  { %p524_p3 = scmp.ne.s32.totalorder %s27_s25, %s523_s9  ;;  %p529_p5 = scmp.lt.s32.totalorder %s523_s9, %s523_s9 }
   0xc   :  { %p530_p6 = por %p529_p5, %p528_p4 }
   0xe   :  { %p531_p7 = pnand %p530_p6, %p524_p3 }
  0x10   :  { %534 = shalt.err (!%p531_p7)
}
  0x11   :  { %29 = dma.hbm_to_vmem [thread:$0]  %s688_s3, 64, %s27_s25, [#allocation3]  }
  0x12   :  { %s535_s11 = scalar_lea.vmem %s39_s23, 16  ;;  %p540_p9 = scmp.lt.s32.totalorder %s39_s23, %s39_s23 }
  0x13   :  { %p536_p8 = scmp.ne.s32.totalorder %s39_s23, %s535_s11  ;;  %p541_p10 = scmp.lt.s32.totalorder %s535_s11, %s535_s11 }
  0x15   :  { %p542_p11 = por %p541_p10, %p540_p9 }
  0x17   :  { %p543_p12 = pnand %p542_p11, %p536_p8 }
  0x19   :  { %546 = shalt.err (!%p543_p12)
}
  0x1a   :  { %s576_s12 = smov [#allocation6]  }
  0x1b   :  { %41 = dma.vmem_to_smem %s39_s23, 16, %s576_s12, [#allocation5]  }
  0x1c   :  { %569 = dma.done.wait [#allocation3], 64  }
  0x1d   :  { %570 = vsyncadd [#allocation3], 4294967232 }
  0x1e   :  { %571 = dma.done.wait [#allocation5], 16  }
  0x1f   :  { %572 = vsyncadd [#allocation5], 4294967280 }
  0x20   :  { %48 = sfence }
  0x21   :  { %v54_v0 = vld [vmem:[%s686_s1] sm:$0xff]  ;;  %v55_v1 = vld [vmem:[%s686_s1 + $0x8] sm:$0xff]  ;;  %v56_v2 = vld [vmem:[%s686_s1 + $0x10] sm:$0xff]  ;;  %vm65_vm0 = vcmask 261120   ;;  %v577_v8 = vmov 0.0|0.0   ;;  %vm578_vm1 = vmmov 0   ;;  %v264_v21 = vlaneseq }
  0x22   :  { %v465_v3 = vpack.c.bf16 %v55_v1, %v54_v0  ;;  %v57_v4 = vld [vmem:[%s686_s1 + $0x18] sm:$0xff]  ;;  %v52_v5 = vld [vmem:[%s685_s0] sm:$0xff]  ;;  %v53_v7 = vld [vmem:[%s685_s0 + $0x8] sm:$0xff]  ;;  %473 = vmatprep.subr.bf16.mxu1 %v577_v8  ;;  %v579_v9 = vmov 0.0   ;;  %v580_v11 = vmov 0   ;;  %vm235_vm3 = vcmask 125952  }
  0x23   :  { %v469_v6 = vpack.c.bf16 %v57_v4, %v56_v2  ;;  %455 = vmatprep.mubr.msk.f32.mxu0 %vm65_vm0, %v52_v5  ;;  %462 = vmatprep.mubr.msk.f32.mxu1 %vm578_vm1, %v579_v9  ;;  %v150_v10 = vld [vmem:[%s689_s4] sm:$0xf]  ;;  %vm475_vm2 = vmpackc.low %vm65_vm0, %vm65_vm0  ;;  %v581_v22 = vmov 1966171168   ;;  %v265_v24 = vshrl.u32 %v264_v21, 7  ;;  %s431_s29 = sld [smem:[#allocation6 + $0x2]] }
  0x24   :  { %466 = vmatprep.subr.bf16.mxu0 %v465_v3  ;;  %494 = vset.pattern.permute.xlu0 %v580_v11  ;;  %v432_v12 = vld [vmem:[%s687_s2] ss:$0 sm:$0xff]  ;;  %v310_v23 = vunpack.c.l.s4 %v581_v22  ;;  %s582_s27 = smov 1e-12   ;;  %s430_s30 = sld [smem:[#allocation6 + $0x1]]  ;;  %vm403_vm4 = vcmask 130048  }
  0x25   :  { %468 = vmatpush3.bf16.msra.mxu0 %v465_v3  ;;  %153 = vperm.xlu0 %494, %v150_v10   ;;  %v149_v20 = vld [vmem:[#allocation2] sm:$0xf]  ;;  %v266_v34 = vsub.s32 0, %v265_v24  ;;  %v288_v45 = vsub.s32 2, %v265_v24  ;;  %v277_v46 = vsub.s32 1, %v265_v24  ;;  %v299_v49 = vsub.s32 3, %v265_v24 }
  0x26   :  { %470 = vmatprep.subr.bf16.mxu0 %v469_v6  ;;  %v311_v25 = vunpack.c.0.s8 %v310_v23  ;;  %s49_s10 = sld [smem:[#allocation6]]  ;;  %s583_s11 = smov [#allocation7]  }
  0x27   :  { %s417_s12 = sshll.u32 %s583_s11, 4  ;;  %s418_s12 = int_to_ptr.vmem [resolvable:$true] %s417_s12 }
  0x28   :  { %v314_v28 = vsub.s32 %v311_v25, %v265_v24  ;;  %s547_s13 = scalar_lea.vmem %s418_s12, 1024  ;;  %p552_p0 = scmp.lt.s32.totalorder %s418_s12, %s418_s12 }
  0x29   :  { %472 = vmatpush3.bf16.msra.mxu0 %v469_v6  ;;  %p548_p13 = scmp.ne.s32.totalorder %s418_s12, %s547_s13  ;;  %p553_p1 = scmp.lt.s32.totalorder %s547_s13, %s547_s13 }
  0x2b   :  { %p554_p2 = por %p553_p1, %p552_p0 }
  0x2c   :  { %456 = vmatmul.mubr.msk.f32.vlgmr.msra.gmra.mrb[0].mxu0 %vm65_vm0, %v53_v7 }
  0x2d   :  { %p555_p3 = pnand %p554_p2, %p548_p13 }
  0xa4   :  { %v154_v26 = vpop.permute.xlu0 %153 }
  0xff   :  { %v457_v13 = vpop.f32.mrb[0].mxu0 }
 0x100   :  { %v144_v14 = vadd.f32 %v457_v13, %v432_v12  ;;  %v138_v15 = vpop.f32.mrb[1].mxu0 }
 0x101   :  { %v139_v16 = vadd.f32 %v432_v12, %v138_v15 }
 0x102   :  { %v148_v17 = vmax.f32 %v144_v14, 0.0 }
 0x103   :  { %v147_v18 = vmax.f32 %v139_v16, 0.0 }
 0x105   :  { %v474_v19 = vpack.c.bf16 %v148_v17, %v147_v18 }
 0x107   :  { %476 = vmatpush3.bf16.xpose.msk.msra.mxu1 %vm475_vm2, %v474_v19 }
 0x10e   :  { %463 = vmatmul.mubr.msk.f32.vlgmr.msra.gmra.mrb[0].mxu1 %vm65_vm0, %v149_v20 }
 0x1e1   :  { %v231_v27 = vpop.f32.mrb[0].mxu1 }
 0x1e2   :  { %v232_v29 = vadd.f32 %v231_v27, %v154_v26  ;;  %v464_v30 = vpop.f32.mrb[1].mxu1 }
 0x1e4   :  { %v246_v31 = vsel %vm235_vm3, %v232_v29, inf  ;;  %v236_v32 = vsel %vm235_vm3, %v232_v29, -inf  ;;  %v315_v33 = vrot.slane %v232_v29, %v314_v28  ;;  %v267_v44 = vrot.slane %v232_v29, %v266_v34 }
 0x1e5   :  { %247 = vmin.xlane.f32.xlu1 %v246_v31  ;;  %237 = vmax.xlane.f32.xlu0 %v236_v32  ;;  %v289_v47 = vrot.slane %v232_v29, %v288_v45  ;;  %v278_v48 = vrot.slane %v232_v29, %v277_v46  ;;  %v300_v50 = vrot.slane %v232_v29, %v299_v49 }
 0x1e6   :  { %v323_v35 = vrot.slane %v315_v33, %v314_v28  ;;  %v316_v36 = vcombine.high %v315_v33, %v315_v33 }
 0x1e8   :  { %v336_v37 = vrot.slane %v323_v35, %v266_v34  ;;  %v331_v38 = vcombine.high %v323_v35, %v323_v35  ;;  %v330_v39 = vrot.slane %v316_v36, %v314_v28 }
 0x1ea   :  { %v344_v40 = vrot.slane %v331_v38, %v266_v34  ;;  %v340_v41 = vrot.slane %v330_v39, %v266_v34  ;;  %v332_v42 = vcombine.high %v330_v39, %v330_v39 }
 0x1ec   :  { %v348_v43 = vrot.slane %v332_v42, %v266_v34 }
 0x1f6   :  { %269 = vbcast.lane.b32.xlu1 %v267_v44, 256 }
 0x1fa   :  { %273 = vbcast.lane.b32.xlu1 %v267_v44, 264  ;;  %v394_v44 = vstv %s49_s10 }
 0x1fb   :  { %295 = vbcast.lane.b32.xlu0 %v289_v47, 264 }
 0x1fe   :  { %280 = vbcast.lane.b32.xlu1 %v278_v48, 256 }
 0x202   :  { %284 = vbcast.lane.b32.xlu1 %v278_v48, 264 }
 0x206   :  { %291 = vbcast.lane.b32.xlu1 %v289_v47, 256 }
 0x20a   :  { %302 = vbcast.lane.b32.xlu1 %v300_v50, 256 }
 0x20e   :  { %306 = vbcast.lane.b32.xlu1 %v300_v50, 264 }
 0x272   :  { %v248_v51 = vpop.xlane.xlu1 %247  ;;  %v238_v52 = vpop.xlane.xlu0 %237 }
 0x273   :  { %v249_v53 = vrot.slane %v248_v51, 4  ;;  %v239_v54 = vrot.slane %v238_v52, 4 }
 0x275   :  { %v250_v55 = vmin.f32 %v248_v51, %v249_v53  ;;  %v240_v56 = vmax.f32 %v238_v52, %v239_v54 }
 0x276   :  { %v270_v3 = vpop.permute.xlu1 %269  ;;  %v296_v9 = vpop.permute.xlu0 %295 }
 0x277   :  { %v251_v57 = vrot.slane %v250_v55, 2  ;;  %v241_v58 = vrot.slane %v240_v56, 2  ;;  %v353_v10 = vsub.f32 %v270_v3, %v336_v37  ;;  %v358_v15 = vsub.f32 %v296_v9, %v344_v40 }
 0x279   :  { %v242_v59 = vmax.f32 %v240_v56, %v241_v58  ;;  %v252_v60 = vmin.f32 %v250_v55, %v251_v57  ;;  %v361_v19 = vmul.f32 %v353_v10, %v353_v10  ;;  %v366_v23 = vmul.f32 %v358_v15, %v358_v15 }
 0x27a   :  { %v274_v4 = vpop.permute.xlu1 %273 }
 0x27b   :  { %v243_v61 = vrot.slane %v242_v59, 1  ;;  %v253_v62 = vrot.slane %v252_v60, 1  ;;  %v354_v11 = vsub.f32 %v274_v4, %v336_v37 }
 0x27d   :  { %v244_v63 = vmax.f32 %v242_v59, %v243_v61  ;;  %v254_v0 = vmin.f32 %v252_v60, %v253_v62  ;;  %v362_v20 = vmul.f32 %v354_v11, %v354_v11 }
 0x27e   :  { %v281_v5 = vpop.permute.xlu1 %280 }
 0x27f   :  { %477 = vpush %v244_v63  ;;  %v355_v12 = vsub.f32 %v281_v5, %v340_v41 }
 0x280   :  { %479 = vpush %v254_v0 }
 0x281   :  { %v363_v21 = vmul.f32 %v355_v12, %v355_v12 }
 0x282   :  { %v285_v6 = vpop.permute.xlu1 %284 }
 0x283   :  { %v356_v13 = vsub.f32 %v285_v6, %v340_v41 }
 0x285   :  { %v364_v22 = vmul.f32 %v356_v13, %v356_v13 }
 0x286   :  { %v292_v7 = vpop.permute.xlu1 %291 }
 0x287   :  { %v357_v16 = vsub.f32 %v292_v7, %v344_v40 }
 0x289   :  { %v365_v24 = vmul.f32 %v357_v16, %v357_v16 }
 0x28a   :  { %v303_v8 = vpop.permute.xlu1 %302 }
 0x28b   :  { %v359_v17 = vsub.f32 %v303_v8, %v348_v43 }
 0x28d   :  { %v367_v25 = vmul.f32 %v359_v17, %v359_v17 }
 0x28e   :  { %v307_v14 = vpop.permute.xlu1 %306 }
 0x28f   :  { %v360_v18 = vsub.f32 %v307_v14, %v348_v43 }
 0x291   :  { %v368_v31 = vmul.f32 %v360_v18, %v360_v18 }
 0x2b0   :  { %s478_s0 = spop %477 }
 0x2b1   :  { %s480_s2 = spop %479 }
 0x2b2   :  { %s256_s4 = ssub.f32 %s478_s0, %s480_s2 }
 0x2b4   :  { %s257_s28 = smax.f32 %s582_s27, %s256_s4 }
 0x2b5   :  { %v258_v1 = vstv %s257_s28 }
 0x2b6   :  { %495 = vrcp.f32 %v258_v1 }
 0x2c0   :  { %v496_v2 = vpop.eup %495 }
 0x2c1   :  { %481 = vpush %v496_v2 }
 0x2f2   :  { %s482_s7 = spop %481 }
 0x2f3   :  { %s261_s8 = smul.f32 %s482_s7, %s431_s29 }
 0x2f5   :  { %s262_s9 = smul.f32 %s261_s8, %s261_s8 }
 0x2f7   :  { %s263_s5 = smul.f32 %s430_s30, %s262_s9 }
 0x2f9   :  { %v369_v26 = vstv %s263_s5 }
 0x2fa   :  { %v370_v27 = vmul.f32 %v369_v26, %v361_v19  ;;  %v371_v28 = vmul.f32 %v369_v26, %v362_v20  ;;  %v372_v29 = vmul.f32 %v369_v26, %v363_v21  ;;  %v373_v30 = vmul.f32 %v369_v26, %v364_v22 }
 0x2fb   :  { %v374_v32 = vmul.f32 %v369_v26, %v365_v24  ;;  %v375_v33 = vmul.f32 %v369_v26, %v366_v23  ;;  %v376_v34 = vmul.f32 %v369_v26, %v367_v25  ;;  %v377_v38 = vmul.f32 %v369_v26, %v368_v31 }
 0x2fc   :  { %v378_v35 = vmul.f32 1.442695, %v370_v27  ;;  %v380_v36 = vmul.f32 1.442695, %v371_v28  ;;  %v382_v37 = vmul.f32 1.442695, %v372_v29 }
 0x2fd   :  { %v384_v39 = vmul.f32 1.442695, %v373_v30  ;;  %v386_v40 = vmul.f32 1.442695, %v374_v32  ;;  %v388_v41 = vmul.f32 1.442695, %v375_v33 }
 0x2fe   :  { %497 = vpow2.f32 %v378_v35  ;;  %v390_v42 = vmul.f32 1.442695, %v376_v34  ;;  %v392_v43 = vmul.f32 1.442695, %v377_v38 }
 0x2ff   :  { %499 = vpow2.f32 %v380_v36 }
 0x300   :  { %501 = vpow2.f32 %v382_v37 }
 0x301   :  { %503 = vpow2.f32 %v384_v39 }
 0x302   :  { %505 = vpow2.f32 %v386_v40 }
 0x303   :  { %507 = vpow2.f32 %v388_v41 }
 0x304   :  { %509 = vpow2.f32 %v390_v42 }
 0x305   :  { %511 = vpow2.f32 %v392_v43 }
 0x308   :  { %v498_v45 = vpop.eup %497 }
 0x309   :  { %v500_v46 = vpop.eup %499  ;;  %v395_v47 = vmul.f32 %v498_v45, %v394_v44 }
 0x30a   :  { %v502_v48 = vpop.eup %501  ;;  %v396_v49 = vmul.f32 %v500_v46, %v394_v44 }
 0x30b   :  { %v504_v50 = vpop.eup %503  ;;  %v397_v51 = vmul.f32 %v502_v48, %v394_v44  ;;  %404 = vst.msk [vmem:[#allocation7] sm:$0xff] %vm403_vm4, %v395_v47 }
 0x30c   :  { %v506_v52 = vpop.eup %505  ;;  %v398_v53 = vmul.f32 %v504_v50, %v394_v44  ;;  %405 = vst.msk [vmem:[#allocation7 + $0x8] sm:$0xff] %vm403_vm4, %v396_v49 }
 0x30d   :  { %v508_v54 = vpop.eup %507  ;;  %v399_v55 = vmul.f32 %v506_v52, %v394_v44  ;;  %406 = vst.msk [vmem:[#allocation7 + $0x10] sm:$0xff] %vm403_vm4, %v397_v51 }
 0x30e   :  { %v510_v56 = vpop.eup %509  ;;  %v400_v57 = vmul.f32 %v508_v54, %v394_v44  ;;  %407 = vst.msk [vmem:[#allocation7 + $0x18] sm:$0xff] %vm403_vm4, %v398_v53 }
 0x30f   :  { %v512_v58 = vpop.eup %511  ;;  %v401_v59 = vmul.f32 %v510_v56, %v394_v44  ;;  %408 = vst.msk [vmem:[#allocation7 + $0x20] sm:$0xff] %vm403_vm4, %v399_v55 }
 0x310   :  { %v402_v60 = vmul.f32 %v512_v58, %v394_v44  ;;  %409 = vst.msk [vmem:[#allocation7 + $0x28] sm:$0xff] %vm403_vm4, %v400_v57 }
 0x311   :  { %410 = vst.msk [vmem:[#allocation7 + $0x30] sm:$0xff] %vm403_vm4, %v401_v59 }
 0x312   :  { %411 = vst.msk [vmem:[#allocation7 + $0x38] sm:$0xff] %vm403_vm4, %v402_v60 }
 0x313   :  { %558 = shalt.err (!%p555_p3)
}
 0x314   :  { %s559_s3 = scalar_lea.hbm %s691_s6, 1024 }
 0x315   :  { %p560_p4 = scmp.ne.s32.totalorder %s691_s6, %s559_s3  ;;  %p563_p5 = scmp.lt.u32.totalorder %s559_s3, %s691_s6 }
 0x317   :  { %p565_p6 = pnand %p563_p5, %p560_p4 }
 0x319   :  { %568 = shalt.err (!%p565_p6)
}
 0x31a   :  { %s584_s20 = smov 128   ;;  %s585_s21 = smov 8  }
 0x31b   :  { %423 = dma.vmem_to_hbm [thread:$0]  %s418_s12, 1024, %s691_s6, [#allocation4], %s584_s20, %s584_s20, %s585_s21  }
 0x31c   :  { %573 = dma.done.wait [#allocation4], 1024  }
 0x31d   :  { %574 = vsyncadd [#allocation4], 4294966272 }
 0x31e   :  { %427 = vsyncpa [#allocation3], 1 }
 0x31f   :  { %428 = vsyncpa [#allocation4], 1 }
 0x320   :  { %429 = vsyncpa [#allocation5], 1 }

</bundles_post_ra>
